<compile_context>
chip_gen: v5e
topology: v5e:2x2
jax: 0.10.0
libtpu: 0.0.40
codegen_flags: <defaults>
</compile_context>

<pallas_src>
import functools

import jax
import jax.numpy as jnp
from jax import lax
from jax.experimental import pallas as pl
from jax.experimental.pallas import tpu as pltpu


def _round_up(x, m):
    return ((x + m - 1) // m) * m


# ----------------------------------------------------------------------------
# Kernel: one (batch, time-tile) step.
# ----------------------------------------------------------------------------
def _multibranch_kernel(xw_ref, w_ref, b_ref, out_ref, p_ref, *,
                        slice_meta, branch_meta, C_pad, O, TL, TLH):
    # xw_ref : (1, 1, C_pad, 2*TLH) bf16 -- even/odd stride-2 phases of x (w/ halo)
    # w_ref  : (3*O, R)             f32  -- fused, slice-deduplicated weight
    # b_ref  : (3*O, 1)             f32  -- concatenated biases
    # out_ref: (1, 3*O, TL)         f32  -- NCL output tile (time on the lane axis)
    # p_ref  : (R, TL)              f32  -- VMEM scratch: deduped im2col patch matrix
    nb = len(branch_meta)
    rows = nb * O

    # ---- assemble the deduplicated im2col patch matrix in VMEM ----
    # All offsets are static; every store is an 8-aligned full-lane store.
    for u, (phase, shift) in enumerate(slice_meta):
        start = phase * TLH + shift                               # static int
        p_ref[u * C_pad:(u + 1) * C_pad, :] = (
            xw_ref[0, 0, :, start:start + TL].astype(jnp.float32))

    # ---- one fused matmul on the MXU, bias broadcast-added on the VPU ----
    y = jnp.dot(w_ref[...], p_ref[...],
                preferred_element_type=jnp.float32)               # (3*O, TL)
    y = y + b_ref[...]                                            # lane broadcast

    # ---- zero the time positions that F.pad filled (boundary tiles only) ----
    t0 = pl.program_id(1) * TL
    lo_full = max(left for (left, _lo) in branch_meta)
    hi_full = min(left + lo for (left, lo) in branch_meta)
    full = (t0 >= lo_full) & (t0 + TL <= hi_full)

    @pl.when(full)
    def _():
        out_ref[0] = y

    @pl.when(jnp.logical_not(full))
    def _():
        t_glob = lax.broadcasted_iota(jnp.int32, (rows, TL), 1) + t0
        row_id = lax.broadcasted_iota(jnp.int32, (rows, TL), 0)
        valid = None
        for i, (left, lout) in enumerate(branch_meta):
            cur = ((row_id >= i * O) & (row_id < (i + 1) * O) &
                   (t_glob >= left) & (t_glob < left + lout))
            valid = cur if valid is None else (valid | cur)
        out_ref[0] = jnp.where(valid, y, 0.0)


# ----------------------------------------------------------------------------
# Wrapper: phase decomposition, fused weight packing, pallas_call.
# ----------------------------------------------------------------------------
def multibranch_conv1d_lprn(x, weights, biases, kernel_sizes,
                            *, time_tile=2048, x_dtype=jnp.bfloat16):
    """x: (B, C, L) f32.  weights[i]: (O, C, k_i).  Returns (B, 3*O, L_final) f32."""
    B, C, L = x.shape
    O = weights[0].shape[0]
    stride = 2
    nb = len(kernel_sizes)
    assert nb == 3

    louts = [(L - k) // stride + 1 for k in kernel_sizes]

    # Replicate the module's chained pad-to-match logic (static at trace time).
    l1, l2, l3 = louts
    o1 = o2 = o3 = 0
    if l1 > l2:
        o2 += (l1 - l2) // 2; l2 = l1
    elif l1 < l2:
        o1 += (l2 - l1) // 2; l1 = l2
    if l2 > l3:
        o3 += (l2 - l3) // 2; l3 = l2
    elif l2 < l3:
        o2 += (l3 - l2) // 2; l2 = l3
    assert l1 == l2 == l3, "torch.cat would fail for these kernel sizes"
    L_final = l1
    lefts = [o1, o2, o3]
    pad_front = max(lefts)

    # ---- deduplicated (phase, shift) slice set shared by all branch taps ----
    # tap j of a stride-2 conv reads phase (j % 2) shifted by (j // 2);
    # `lefts[i]` is branch i's F.pad left-offset in the common timeline.
    slice_set = sorted({(j % 2, pad_front - lefts[i] + j // 2)
                        for i, k in enumerate(kernel_sizes) for j in range(k)})
    slice_idx = {s: u for u, s in enumerate(slice_set)}
    max_shift = max(s for (_p, s) in slice_set)
    n_slices = len(slice_set)

    # ---- time tiling (lane axis): TL multiple of 128, both grid axes parallel ----
    TL = min(_round_up(time_tile, 128), _round_up(L_final, 128))
    L_pad = _round_up(L_final, TL)
    n_tiles = L_pad // TL
    TLH = TL + max_shift                     # per-tile halo for the largest shift

    # ---- channel padding to a sublane multiple; bf16 for HBM traffic ----
    C_pad = _round_up(C, 8)
    xq = x.astype(x_dtype)
    if C_pad > C:
        xq = jnp.pad(xq, ((0, 0), (0, C_pad - C), (0, 0)))

    # ---- stride-2 phase decomposition of x (same bytes as x, no im2col blowup) ----
    Lh = (L + 1) // 2
    x_e = xq[:, :, 0::2]                                 # x[..., 2t]     (B, C_pad, Lh)
    x_o = xq[:, :, 1::2]                                 # x[..., 2t + 1]
    if x_o.shape[-1] < Lh:
        x_o = jnp.pad(x_o, ((0, 0), (0, 0), (0, Lh - x_o.shape[-1])))

    LPH = (n_tiles - 1) * TL + TLH
    back = max(LPH - pad_front - Lh, 0)
    x_e = jnp.pad(x_e, ((0, 0), (0, 0), (pad_front, back)))
    x_o = jnp.pad(x_o, ((0, 0), (0, 0), (pad_front, back)))

    # Per-tile windows (tiny halo duplication only); phases packed side-by-side
    # on the lane axis so all in-kernel slices use static offsets.
    wins = []
    for t in range(n_tiles):
        wins.append(jnp.concatenate(
            [x_e[:, :, t * TL:t * TL + TLH], x_o[:, :, t * TL:t * TL + TLH]],
            axis=-1))
    windows = jnp.stack(wins, axis=1)        # (B, n_tiles, C_pad, 2*TLH), bf16

    # ---- fused, slice-deduplicated weight (f32, tiny & resident in VMEM) ----
    R = C_pad * n_slices
    Wf = jnp.zeros((nb * O, R), jnp.float32)
    for i, k in enumerate(kernel_sizes):
        for j in range(k):
            u = slice_idx[(j % 2, pad_front - lefts[i] + j // 2)]
            Wf = Wf.at[i * O:(i + 1) * O,
                       u * C_pad:u * C_pad + C].set(
                           weights[i][:, :, j].astype(jnp.float32))
    bias_col = jnp.concatenate(
        [b.astype(jnp.float32) for b in biases]).reshape(nb * O, 1)

    kern = functools.partial(
        _multibranch_kernel,
        slice_meta=tuple(slice_set),
        branch_meta=tuple((lefts[i], louts[i]) for i in range(nb)),
        C_pad=C_pad, O=O, TL=TL, TLH=TLH)

    out = pl.pallas_call(
        kern,
        out_shape=jax.ShapeDtypeStruct((B, nb * O, L_pad), jnp.float32),
        grid=(B, n_tiles),
        in_specs=[
            pl.BlockSpec((1, 1, C_pad, 2 * TLH), lambda b, t: (b, t, 0, 0)),
            pl.BlockSpec((nb * O, R), lambda b, t: (0, 0)),   # weight stays resident
            pl.BlockSpec((nb * O, 1), lambda b, t: (0, 0)),   # bias stays resident
        ],
        out_specs=pl.BlockSpec((1, nb * O, TL), lambda b, t: (b, 0, t)),
        scratch_shapes=[pltpu.VMEM((R, TL), jnp.float32)],
        compiler_params=pltpu.CompilerParams(
            dimension_semantics=("parallel", "parallel")),
        # Per-step VMEM is ~1 MiB at TL=2048; comfortably inside the default
        # scoped VMEM on v5e/v6e/v7x.  Raise time_tile further for very long
        # sequences if you want fewer grid steps.
    )(windows, Wf, bias_col)

    # Output is already NCL (B, 3*O, time); just drop the 128-alignment padding.
    return out[:, :, :L_final]


# ----------------------------------------------------------------------------
# Pure-JAX reference (mirrors the PyTorch forward, dropout as identity).
# ----------------------------------------------------------------------------
def _reference(x, weights, biases, kernel_sizes):
    stride = 2
    outs = []
    for w, b in zip(weights, biases):
        y = lax.conv_general_dilated(
            x, w, window_strides=(stride,), padding="VALID",
            dimension_numbers=("NCH", "OIH", "NCH"),
            precision=lax.Precision.HIGHEST)
        outs.append(y + b[None, :, None])
    x1, x2, x3 = outs

    def pad_t(t, left, right):
        return jnp.pad(t, ((0, 0), (0, 0), (left, right)))

    if x1.shape[2] > x2.shape[2]:
        d = x1.shape[2] - x2.shape[2]; x2 = pad_t(x2, d // 2, d - d // 2)
    elif x1.shape[2] < x2.shape[2]:
        d = x2.shape[2] - x1.shape[2]; x1 = pad_t(x1, d // 2, d - d // 2)
    if x2.shape[2] > x3.shape[2]:
        d = x2.shape[2] - x3.shape[2]; x3 = pad_t(x3, d // 2, d - d // 2)
    elif x2.shape[2] < x3.shape[2]:
        d = x3.shape[2] - x2.shape[2]; x2 = pad_t(x2, d // 2, d - d // 2)
    return jnp.concatenate((x1, x2, x3), axis=1)


if __name__ == "__main__":
    # Small shapes consistent with the module: Conv1d input is (N, C, L).
    B, C, O, L = 2, 4, 8, 16
    kernel_sizes = (3, 5, 7)

    key = jax.random.PRNGKey(0)
    kx, *kws = jax.random.split(key, 1 + 2 * len(kernel_sizes))
    x = jax.random.normal(kx, (B, C, L), dtype=jnp.float32)

    # Deterministic parameter init (PyTorch Conv1d-style uniform bounds).
    weights, biases = [], []
    for i, k in enumerate(kernel_sizes):
        bound = 1.0 / (C * k) ** 0.5
        w = jax.random.uniform(kws[2 * i], (O, C, k), jnp.float32, -bound, bound)
        b = jax.random.uniform(kws[2 * i + 1], (O,), jnp.float32, -bound, bound)
        weights.append(w)
        biases.append(b)

    fwd = jax.jit(lambda xx, ws, bs: multibranch_conv1d_lprn(xx, ws, bs, kernel_sizes))
    out = jax.block_until_ready(fwd(x, weights, biases))

    # The kernel ships x to HBM in bf16 (weights/bias stay f32, accumulation f32),
    # so compare tightly against a reference fed identically bf16-quantized x,
    # and loosely against the pure-f32 module output.
    q = lambda a: a.astype(jnp.bfloat16).astype(jnp.float32)
    ref_q = _reference(q(x), weights, biases, kernel_sizes)
    ref_f = _reference(x, weights, biases, kernel_sizes)

    assert out.shape == ref_f.shape, (out.shape, ref_f.shape)
    assert jnp.allclose(out, ref_q, rtol=2e-3, atol=2e-3), \
        float(jnp.abs(out - ref_q).max())
    assert jnp.allclose(out, ref_f, rtol=5e-2, atol=5e-2), \
        float(jnp.abs(out - ref_f).max())

    print("KERNEL_OK")
</pallas_src>

<mosaic_0001>
module attributes {stable_mosaic.version = 11 : i64} {
  func.func @_multibranch_kernel(%arg0: i32, %arg1: i32, %arg2: memref<1x1x8x262xbf16, #tpu.memory_space<vmem>>, %arg3: memref<24x56xf32, #tpu.memory_space<vmem>>, %arg4: memref<24x1xf32, #tpu.memory_space<vmem>>, %arg5: memref<1x24x128xf32, #tpu.memory_space<vmem>>, %arg6: memref<56x128xf32, #tpu.memory_space<vmem>>) attributes {dimension_semantics = [#tpu.dimension_semantics<parallel>, #tpu.dimension_semantics<parallel>], iteration_bounds = array<i64: 2, 1>, scalar_prefetch = 0 : i64, scratch_operands = 1 : i64, tpu.core_type = #tpu.core_type<tc>, window_params = [{transform_indices = @transform_0, window_bounds = array<i64: 1, 1, 8, 262>}, {pipeline_mode = #tpu.pipeline_mode<synchronous>, transform_indices = @transform_1, window_bounds = array<i64: 24, 56>}, {pipeline_mode = #tpu.pipeline_mode<synchronous>, transform_indices = @transform_2, window_bounds = array<i64: 24, 1>}, {transform_indices = @transform_3, window_bounds = array<i64: 1, 24, 128>}]} {
    %c0 = arith.constant 0 : index
    %c0_0 = arith.constant 0 : index
    %c0_1 = arith.constant 0 : index
    %c0_2 = arith.constant 0 : index
    %0 = vector.load %arg2[%c0, %c0_0, %c0_1, %c0_2] : memref<1x1x8x262xbf16, #tpu.memory_space<vmem>>, vector<1x1x8x128xbf16>
    %1 = vector.shape_cast %0 : vector<1x1x8x128xbf16> to vector<8x128xbf16>
    %2 = arith.extf %1 : vector<8x128xbf16> to vector<8x128xf32>
    %c0_3 = arith.constant 0 : index
    %c0_4 = arith.constant 0 : index
    %3 = vector.load %arg6[%c0_3, %c0_4] : memref<56x128xf32, #tpu.memory_space<vmem>>, vector<8x128xf32>
    tpu.vector_store %arg6[%c0_3, %c0_4], %2 {strides = array<i32>} : memref<56x128xf32, #tpu.memory_space<vmem>>, vector<8x128xf32>,
    %c0_5 = arith.constant 0 : index
    %c0_6 = arith.constant 0 : index
    %c0_7 = arith.constant 0 : index
    %c1 = arith.constant 1 : index
    %4 = vector.load %arg2[%c0_5, %c0_6, %c0_7, %c1] : memref<1x1x8x262xbf16, #tpu.memory_space<vmem>>, vector<1x1x8x128xbf16>
    %5 = vector.shape_cast %4 : vector<1x1x8x128xbf16> to vector<8x128xbf16>
    %6 = arith.extf %5 : vector<8x128xbf16> to vector<8x128xf32>
    %c8 = arith.constant 8 : index
    %c0_8 = arith.constant 0 : index
    %7 = vector.load %arg6[%c8, %c0_8] : memref<56x128xf32, #tpu.memory_space<vmem>>, vector<8x128xf32>
    tpu.vector_store %arg6[%c8, %c0_8], %6 {strides = array<i32>} : memref<56x128xf32, #tpu.memory_space<vmem>>, vector<8x128xf32>,
    %c0_9 = arith.constant 0 : index
    %c0_10 = arith.constant 0 : index
    %c0_11 = arith.constant 0 : index
    %c2 = arith.constant 2 : index
    %8 = vector.load %arg2[%c0_9, %c0_10, %c0_11, %c2] : memref<1x1x8x262xbf16, #tpu.memory_space<vmem>>, vector<1x1x8x128xbf16>
    %9 = vector.shape_cast %8 : vector<1x1x8x128xbf16> to vector<8x128xbf16>
    %10 = arith.extf %9 : vector<8x128xbf16> to vector<8x128xf32>
    %c16 = arith.constant 16 : index
    %c0_12 = arith.constant 0 : index
    %11 = vector.load %arg6[%c16, %c0_12] : memref<56x128xf32, #tpu.memory_space<vmem>>, vector<8x128xf32>
    tpu.vector_store %arg6[%c16, %c0_12], %10 {strides = array<i32>} : memref<56x128xf32, #tpu.memory_space<vmem>>, vector<8x128xf32>,
    %c0_13 = arith.constant 0 : index
    %c0_14 = arith.constant 0 : index
    %c0_15 = arith.constant 0 : index
    %c3 = arith.constant 3 : index
    %12 = vector.load %arg2[%c0_13, %c0_14, %c0_15, %c3] : memref<1x1x8x262xbf16, #tpu.memory_space<vmem>>, vector<1x1x8x128xbf16>
    %13 = vector.shape_cast %12 : vector<1x1x8x128xbf16> to vector<8x128xbf16>
    %14 = arith.extf %13 : vector<8x128xbf16> to vector<8x128xf32>
    %c24 = arith.constant 24 : index
    %c0_16 = arith.constant 0 : index
    %15 = vector.load %arg6[%c24, %c0_16] : memref<56x128xf32, #tpu.memory_space<vmem>>, vector<8x128xf32>
    tpu.vector_store %arg6[%c24, %c0_16], %14 {strides = array<i32>} : memref<56x128xf32, #tpu.memory_space<vmem>>, vector<8x128xf32>,
    %c0_17 = arith.constant 0 : index
    %c0_18 = arith.constant 0 : index
    %c0_19 = arith.constant 0 : index
    %c131 = arith.constant 131 : index
    %16 = vector.load %arg2[%c0_17, %c0_18, %c0_19, %c131] : memref<1x1x8x262xbf16, #tpu.memory_space<vmem>>, vector<1x1x8x128xbf16>
    %17 = vector.shape_cast %16 : vector<1x1x8x128xbf16> to vector<8x128xbf16>
    %18 = arith.extf %17 : vector<8x128xbf16> to vector<8x128xf32>
    %c32 = arith.constant 32 : index
    %c0_20 = arith.constant 0 : index
    %19 = vector.load %arg6[%c32, %c0_20] : memref<56x128xf32, #tpu.memory_space<vmem>>, vector<8x128xf32>
    tpu.vector_store %arg6[%c32, %c0_20], %18 {strides = array<i32>} : memref<56x128xf32, #tpu.memory_space<vmem>>, vector<8x128xf32>,
    %c0_21 = arith.constant 0 : index
    %c0_22 = arith.constant 0 : index
    %c0_23 = arith.constant 0 : index
    %c132 = arith.constant 132 : index
    %20 = vector.load %arg2[%c0_21, %c0_22, %c0_23, %c132] : memref<1x1x8x262xbf16, #tpu.memory_space<vmem>>, vector<1x1x8x128xbf16>
    %21 = vector.shape_cast %20 : vector<1x1x8x128xbf16> to vector<8x128xbf16>
    %22 = arith.extf %21 : vector<8x128xbf16> to vector<8x128xf32>
    %c40 = arith.constant 40 : index
    %c0_24 = arith.constant 0 : index
    %23 = vector.load %arg6[%c40, %c0_24] : memref<56x128xf32, #tpu.memory_space<vmem>>, vector<8x128xf32>
    tpu.vector_store %arg6[%c40, %c0_24], %22 {strides = array<i32>} : memref<56x128xf32, #tpu.memory_space<vmem>>, vector<8x128xf32>,
    %c0_25 = arith.constant 0 : index
    %c0_26 = arith.constant 0 : index
    %c0_27 = arith.constant 0 : index
    %c133 = arith.constant 133 : index
    %24 = vector.load %arg2[%c0_25, %c0_26, %c0_27, %c133] : memref<1x1x8x262xbf16, #tpu.memory_space<vmem>>, vector<1x1x8x128xbf16>
    %25 = vector.shape_cast %24 : vector<1x1x8x128xbf16> to vector<8x128xbf16>
    %26 = arith.extf %25 : vector<8x128xbf16> to vector<8x128xf32>
    %c48 = arith.constant 48 : index
    %c0_28 = arith.constant 0 : index
    %27 = vector.load %arg6[%c48, %c0_28] : memref<56x128xf32, #tpu.memory_space<vmem>>, vector<8x128xf32>
    tpu.vector_store %arg6[%c48, %c0_28], %26 {strides = array<i32>} : memref<56x128xf32, #tpu.memory_space<vmem>>, vector<8x128xf32>,
    %c0_29 = arith.constant 0 : index
    %c0_30 = arith.constant 0 : index
    %28 = vector.load %arg3[%c0_29, %c0_30] : memref<24x56xf32, #tpu.memory_space<vmem>>, vector<24x56xf32>
    %c0_31 = arith.constant 0 : index
    %c0_32 = arith.constant 0 : index
    %29 = vector.load %arg6[%c0_31, %c0_32] : memref<56x128xf32, #tpu.memory_space<vmem>>, vector<56x128xf32>
    %cst = arith.constant dense<0.000000e+00> : vector<24x128xf32>
    %30 = tpu.matmul %28, %29, %cst {dimension_numbers = #tpu.dot_dimension_numbers<[1], [0], [0], [1], [0, 0, 1, 1], [], []>} : vector<24x56xf32>, vector<56x128xf32>, vector<24x128xf32> -> vector<24x128xf32>
    %c0_33 = arith.constant 0 : index
    %c0_34 = arith.constant 0 : index
    %31 = vector.load %arg4[%c0_33, %c0_34] : memref<24x1xf32, #tpu.memory_space<vmem>>, vector<24x1xf32>
    %32 = vector.broadcast %31 : vector<24x1xf32> to vector<24x128xf32>
    %33 = arith.addf %30, %32 : vector<24x128xf32>
    %c128_i32 = arith.constant 128 : i32
    %34 = arith.muli %arg1, %c128_i32 : i32
    %c1_i32 = arith.constant 1 : i32
    %35 = arith.cmpi sge, %34, %c1_i32 : i32
    %c128_i32_35 = arith.constant 128 : i32
    %36 = arith.addi %34, %c128_i32_35 : i32
    %c6_i32 = arith.constant 6 : i32
    %37 = arith.cmpi sle, %36, %c6_i32 : i32
    %38 = arith.andi %35, %37 : i1
    %39 = arith.extui %38 : i1 to i32
    %c0_i32 = arith.constant 0 : i32
    %40 = arith.cmpi ne, %39, %c0_i32 : i32
    scf.if %40 {
      %c0_37 = arith.constant 0 : index
      %c0_38 = arith.constant 0 : index
      %c0_39 = arith.constant 0 : index
      %44 = vector.load %arg5[%c0_37, %c0_38, %c0_39] : memref<1x24x128xf32, #tpu.memory_space<vmem>>, vector<1x24x128xf32>
      %45 = vector.shape_cast %44 : vector<1x24x128xf32> to vector<24x128xf32>
      %46 = vector.shape_cast %33 : vector<24x128xf32> to vector<1x24x128xf32>
      tpu.vector_store %arg5[%c0_37, %c0_38, %c0_39], %46 {strides = array<i32>} : memref<1x24x128xf32, #tpu.memory_space<vmem>>, vector<1x24x128xf32>,
    } else {
    }
    %true = arith.constant true
    %41 = arith.xori %38, %true : i1
    %42 = arith.extui %41 : i1 to i32
    %c0_i32_36 = arith.constant 0 : i32
    %43 = arith.cmpi ne, %42, %c0_i32_36 : i32
    scf.if %43 {
      %44 = tpu.iota {dimensions = array<i32: 1>} : vector<24x128xi32>
      %45 = vector.broadcast %34 : i32 to vector<24x128xi32>
      %46 = arith.addi %44, %45 : vector<24x128xi32>
      %47 = tpu.iota {dimensions = array<i32: 0>} : vector<24x128xi32>
      %c0_i32_37 = arith.constant 0 : i32
      %48 = vector.broadcast %c0_i32_37 : i32 to vector<24x128xi32>
      %49 = arith.cmpi sge, %47, %48 : vector<24x128xi32>
      %c8_i32 = arith.constant 8 : i32
      %50 = vector.broadcast %c8_i32 : i32 to vector<24x128xi32>
      %51 = arith.cmpi slt, %47, %50 : vector<24x128xi32>
      %52 = arith.andi %49, %51 : vector<24x128xi1>
      %c0_i32_38 = arith.constant 0 : i32
      %53 = vector.broadcast %c0_i32_38 : i32 to vector<24x128xi32>
      %54 = arith.cmpi sge, %46, %53 : vector<24x128xi32>
      %55 = arith.andi %52, %54 : vector<24x128xi1>
      %c7_i32 = arith.constant 7 : i32
      %56 = vector.broadcast %c7_i32 : i32 to vector<24x128xi32>
      %57 = arith.cmpi slt, %46, %56 : vector<24x128xi32>
      %58 = arith.andi %55, %57 : vector<24x128xi1>
      %c8_i32_39 = arith.constant 8 : i32
      %59 = vector.broadcast %c8_i32_39 : i32 to vector<24x128xi32>
      %60 = arith.cmpi sge, %47, %59 : vector<24x128xi32>
      %c16_i32 = arith.constant 16 : i32
      %61 = vector.broadcast %c16_i32 : i32 to vector<24x128xi32>
      %62 = arith.cmpi slt, %47, %61 : vector<24x128xi32>
      %63 = arith.andi %60, %62 : vector<24x128xi1>
      %c0_i32_40 = arith.constant 0 : i32
      %64 = vector.broadcast %c0_i32_40 : i32 to vector<24x128xi32>
      %65 = arith.cmpi sge, %46, %64 : vector<24x128xi32>
      %66 = arith.andi %63, %65 : vector<24x128xi1>
      %c6_i32_41 = arith.constant 6 : i32
      %67 = vector.broadcast %c6_i32_41 : i32 to vector<24x128xi32>
      %68 = arith.cmpi slt, %46, %67 : vector<24x128xi32>
      %69 = arith.andi %66, %68 : vector<24x128xi1>
      %70 = arith.ori %58, %69 : vector<24x128xi1>
      %c16_i32_42 = arith.constant 16 : i32
      %71 = vector.broadcast %c16_i32_42 : i32 to vector<24x128xi32>
      %72 = arith.cmpi sge, %47, %71 : vector<24x128xi32>
      %c24_i32 = arith.constant 24 : i32
      %73 = vector.broadcast %c24_i32 : i32 to vector<24x128xi32>
      %74 = arith.cmpi slt, %47, %73 : vector<24x128xi32>
      %75 = arith.andi %72, %74 : vector<24x128xi1>
      %c1_i32_43 = arith.constant 1 : i32
      %76 = vector.broadcast %c1_i32_43 : i32 to vector<24x128xi32>
      %77 = arith.cmpi sge, %46, %76 : vector<24x128xi32>
      %78 = arith.andi %75, %77 : vector<24x128xi1>
      %c6_i32_44 = arith.constant 6 : i32
      %79 = vector.broadcast %c6_i32_44 : i32 to vector<24x128xi32>
      %80 = arith.cmpi slt, %46, %79 : vector<24x128xi32>
      %81 = arith.andi %78, %80 : vector<24x128xi1>
      %82 = arith.ori %70, %81 : vector<24x128xi1>
      %cst_45 = arith.constant 0.000000e+00 : f32
      %83 = vector.broadcast %cst_45 : f32 to vector<24x128xf32>
      %84 = arith.select %82, %33, %83 : vector<24x128xi1>, vector<24x128xf32>
      %c0_46 = arith.constant 0 : index
      %c0_47 = arith.constant 0 : index
      %c0_48 = arith.constant 0 : index
      %85 = vector.load %arg5[%c0_46, %c0_47, %c0_48] : memref<1x24x128xf32, #tpu.memory_space<vmem>>, vector<1x24x128xf32>
      %86 = vector.shape_cast %85 : vector<1x24x128xf32> to vector<24x128xf32>
      %87 = vector.shape_cast %84 : vector<24x128xf32> to vector<1x24x128xf32>
      tpu.vector_store %arg5[%c0_46, %c0_47, %c0_48], %87 {strides = array<i32>} : memref<1x24x128xf32, #tpu.memory_space<vmem>>, vector<1x24x128xf32>,
    } else {
    }
    return
  }
  func.func @transform_0(%arg0: i32, %arg1: i32) -> (i32, i32, i32, i32) {
    %c0_i32 = arith.constant 0 : i32
    %c0_i32_0 = arith.constant 0 : i32
    %c0_i32_1 = arith.constant 0 : i32
    return %arg0, %arg1, %c0_i32, %c0_i32_0 : i32, i32, i32, i32
  }
  func.func @transform_1(%arg0: i32, %arg1: i32) -> (i32, i32) {
    %c0_i32 = arith.constant 0 : i32
    %c0_i32_0 = arith.constant 0 : i32
    %c0_i32_1 = arith.constant 0 : i32
    return %c0_i32, %c0_i32_0 : i32, i32
  }
  func.func @transform_2(%arg0: i32, %arg1: i32) -> (i32, i32) {
    %c0_i32 = arith.constant 0 : i32
    %c0_i32_0 = arith.constant 0 : i32
    %c0_i32_1 = arith.constant 0 : i32
    return %c0_i32, %c0_i32_0 : i32, i32
  }
  func.func @transform_3(%arg0: i32, %arg1: i32) -> (i32, i32, i32) {
    %c0_i32 = arith.constant 0 : i32
    %c0_i32_0 = arith.constant 0 : i32
    return %arg0, %c0_i32, %arg1 : i32, i32, i32
  }
}

</mosaic_0001>

<bundles_post_ra>
// kernel: _lambda_.1
= control target key start
LH: loop header
LB: loop body
LE: loop exit
PB: predicated region body
PF: predicated region fallthrough
CT: control target
= control target key end

     0   :  { %s659_s12 = smov 0   ;;  %s661_s13 = smov 0   ;;  %s719_s0 = inlined_call_operand.vmem [shape: bf16[2,1,8,262], index: 0, kind: input, shape index: {}]   ;;  %s720_s1 = inlined_call_operand.vmem [shape: f32[24,56], index: 1, kind: input, shape index: {}]   ;;  %s721_s2 = inlined_call_operand.vmem [shape: f32[24,1], index: 2, kind: input, shape index: {}]   ;;  %s722_s3 = inlined_call_operand.vmem [shape: f32[2,24,128], index: 3, kind: output, shape index: {}]  }
   0x1   :  { %s663_s14 = smov 0  }
   0x2 LB: > { %s25_s15 = sadd.s32 1, %s627_s13  ;;  %p522_p0 = scmp.ge.s32.totalorder %s631_s14, 1  ;;  %s631_s14 = sphi %s663_s14, %s13_s14   ;;  %s627_s13 = sphi %s661_s13, %s724_s13   ;;  %s623_s12 = sphi %s659_s12, %s723_s12  }
   0x3   : > { %p27_p1 = scmp.ge.s32.totalorder %s25_s15, 2  ;;  %p157_p2 = scmp.lt.s32.totalorder %s631_s14, 3 }
   0x5   : > { %s726_s15 = smov (%p27_p1, %s25_s15), 0  ;;  %p158_p3 = pnand %p522_p0, %p157_p2 }
   0x6   : > { %p188_p4 = scmp.lt.s32.totalorder (!%p158_p3), %s623_s12, 1  ;;  %s633_s20 = smov (!%p158_p3), 123  }
   0x7   : > { %161 = sbr.rel (%p158_p3) target bundleno = 295 (0x127), region = 32  ;;  %s634_s21 = smov (!%p158_p3), 125  }
   0x8   : > { %s635_s22 = smov (!%p158_p3), 126   ;;  %s636_s23 = smov (!%p158_p3), 124  }
   0x9   : > { %s637_s24 = smov (!%p158_p3), 127  }
   0xc   : > { %s728_s12 = smov (!%p188_p4, %s623_s12), 1  ;;  %v295_v8 = vld [vmem:[%s721_s2] sm:$0xff]  ;;  %v638_v9 = vmov 0   ;;  %v296_v10 = vld [vmem:[%s721_s2 + $0x8] sm:$0xff]  ;;  %v297_v11 = vld [vmem:[%s721_s2 + $0x10] sm:$0xff]  ;;  %vm281_vm0 = vcmask 1006592   ;;  %v363_v41 = vlaneseq }
   0xd   : > { %s544_s16 = smul.u32 12, %s728_s12  ;;  %607 = vset.pattern.permute.xlu1 %v638_v9  ;;  %606 = vset.pattern.permute.xlu0 %v638_v9  ;;  %vm268_vm1 = vcmask 1014784   ;;  %vm243_vm2 = vcmask 1022976   ;;  %vm230_vm3 = vcmask 1031168   ;;  %vm217_vm4 = vcmask 1039360   ;;  %v285_v38 = vld [vmem:[%s720_s1] sm:$0xff] }
   0xe   : > { %608 = vset.pattern.permute.xlu2 %v638_v9  ;;  %v287_v39 = vld [vmem:[%s720_s1 + $0x10] sm:$0xff]  ;;  %vm313_vm5 = vcmask 457728   ;;  %v286_v40 = vld [vmem:[%s720_s1 + $0x8] sm:$0xff]  ;;  %v364_v42 = vand.u32 127, %v363_v41  ;;  %s545_s10 = smul.u32 24, %s728_s12 }
   0xf   : > { %s683_s19 = scalar_lea.vmem %s719_s0, %s544_s16 }
  0x10   : > { %v272_v0 = vld [vmem:[%s683_s19 + $0x4] sm:$0xff]  ;;  %v205_v34 = vld [vmem:[%s683_s19] sm:$0xf]  ;;  %vm384_vm6 = vcmp.lt.s32.totalorder %v364_v42, 7  ;;  %s204_s17 = scalar_lea.vmem %s722_s3, %s545_s10  ;;  %vm400_vm7 = vcmp.lt.s32.totalorder %v364_v42, 6  ;;  %vm416_vm8 = vcmp.ge.s32.totalorder %v364_v42, 1 }
  0x11   : > { %v234_v1 = vld [vmem:[%s683_s19] sm:$0xff]  ;;  %v273_v2 = vunpack.c.l.bf16 %v272_v0  ;;  %v274_v3 = vunpack.c.h.bf16 %v272_v0  ;;  %v206_v37 = vunpack.c.l.bf16 %v205_v34  ;;  %vm422_vm9 = vmand %vm416_vm8, %vm400_vm7 }
  0x12   : > { %v235_v4 = vunpack.c.l.bf16 %v234_v1  ;;  %v236_v5 = vunpack.c.h.bf16 %v234_v1 }
  0x13   : > { %v576_v6 = vpack.i.bf16 %v274_v3, %v273_v2 }
  0x14   : > { %v591_v7 = vpack.i.bf16 %v236_v5, %v235_v4 }
  0x15   : > { %577 = vrot.lane.b32.xlu0 %v576_v6, %s633_s20  ;;  %587 = vrot.lane.b32.xlu1 %v576_v6, %s634_s21 }
  0x16   : > { %597 = vrot.lane.b32.xlu2 %v591_v7, %s635_s22 }
  0x1d   : > { %582 = vrot.lane.b32.xlu0 %v576_v6, %s636_s23  ;;  %592 = vrot.lane.b32.xlu1 %v591_v7, %s634_s21 }
  0x1e   : > { %602 = vrot.lane.b32.xlu2 %v591_v7, %s637_s24 }
  0x25   : > { %300 = vperm.xlu0 %606, %v295_v8   ;;  %305 = vperm.xlu1 %607, %v296_v10  }
  0x26   : > { %310 = vperm.xlu2 %608, %v297_v11  }
  0x70   : > { %v598_v12 = vpop.permute.xlu2 %597 }
  0x71   : > { %v600_v28 = vunpack.i.h.bf16 %v598_v12  ;;  %v599_v29 = vunpack.i.l.bf16 %v598_v12 }
  0x73   : > { %v231_v35 = vsel %vm230_vm3, %v599_v29, %v600_v28 }
  0x78   : > { %v603_v26 = vpop.permute.xlu2 %602 }
  0x79   : > { %v605_v32 = vunpack.i.h.bf16 %v603_v26  ;;  %v604_v33 = vunpack.i.l.bf16 %v603_v26 }
  0x7b   : > { %v218_v36 = vsel %vm217_vm4, %v604_v33, %v605_v32 }
  0x80   : > { %v311_v51 = vpop.permute.xlu2 %310 }
  0x87   : > { %v578_v13 = vpop.permute.xlu0 %577  ;;  %v588_v14 = vpop.permute.xlu1 %587 }
  0x88   : > { %v580_v15 = vunpack.i.h.bf16 %v578_v13  ;;  %v579_v16 = vunpack.i.l.bf16 %v578_v13  ;;  %v590_v18 = vunpack.i.h.bf16 %v588_v14  ;;  %v589_v19 = vunpack.i.l.bf16 %v588_v14 }
  0x8a   : > { %v282_v17 = vsel %vm281_vm0, %v579_v16, %v580_v15  ;;  %v256_v30 = vsel %vm243_vm2, %v589_v19, %v590_v18 }
  0x8b   : > { %332 = vmatpush.msra.mxu0 %v282_v17  ;;  %530 = vmatpush.msra.mxu1 %v282_v17 }
  0x8c   : > { %531 = vmatpush.msra.mxu2 %v282_v17 }
  0x8f   : > { %v583_v20 = vpop.permute.xlu0 %582  ;;  %v593_v21 = vpop.permute.xlu1 %592 }
  0x90   : > { %v585_v22 = vunpack.i.h.bf16 %v583_v20  ;;  %v584_v23 = vunpack.i.l.bf16 %v583_v20  ;;  %v595_v24 = vunpack.i.h.bf16 %v593_v21  ;;  %v594_v25 = vunpack.i.l.bf16 %v593_v21 }
  0x92   : > { %v269_v27 = vsel %vm268_vm1, %v584_v23, %v585_v22  ;;  %v244_v31 = vsel %vm243_vm2, %v594_v25, %v595_v24 }
  0x93   : > { %333 = vmatpush.msra.mxu0 %v269_v27  ;;  %532 = vmatpush.msra.mxu1 %v269_v27 }
  0x94   : > { %533 = vmatpush.msra.mxu2 %v269_v27 }
  0x95   : > { %334 = vmatpush.msra.mxu0 %v256_v30  ;;  %534 = vmatpush.msra.mxu1 %v256_v30 }
  0x96   : > { %535 = vmatpush.msra.mxu2 %v256_v30 }
  0x97   : > { %335 = vmatpush.msra.mxu0 %v244_v31  ;;  %536 = vmatpush.msra.mxu1 %v244_v31  ;;  %v301_v43 = vpop.permute.xlu0 %300  ;;  %v306_v44 = vpop.permute.xlu1 %305 }
  0x98   : > { %537 = vmatpush.msra.mxu2 %v244_v31 }
  0x99   : > { %336 = vmatpush.msra.mxu0 %v231_v35  ;;  %538 = vmatpush.msra.mxu1 %v231_v35 }
  0x9a   : > { %539 = vmatpush.msra.mxu2 %v231_v35 }
  0x9b   : > { %337 = vmatpush.msra.mxu0 %v218_v36  ;;  %540 = vmatpush.msra.mxu1 %v218_v36 }
  0x9c   : > { %541 = vmatpush.msra.mxu2 %v218_v36 }
  0x9d   : > { %338 = vmatpush.msra.mxu0 %v206_v37  ;;  %542 = vmatpush.msra.mxu1 %v206_v37 }
  0x9e   : > { %543 = vmatpush.msra.mxu2 %v206_v37  ;;  %525 = vmatmul.msk.f32.vlgmr.msra.gmra.mxu0 %vm313_vm5, %v285_v38 }
  0x9f   : > { %527 = vmatmul.msk.f32.vlgmr.msra.gmra.mxu2 %vm313_vm5, %v287_v39  ;;  %526 = vmatmul.msk.f32.vlgmr.msra.gmra.mxu1 %vm313_vm5, %v286_v40 }
 0x11b   : > { %v340_v45 = vpop.f32.mrf.mxu0 }
 0x11c   : > { %v341_v46 = vadd.f32 %v340_v45, %v301_v43  ;;  %v343_v47 = vpop.f32.mrf.mxu1 }
 0x11d   : > { %v344_v48 = vadd.f32 %v343_v47, %v306_v44 }
 0x11e   : > { %v426_v49 = vsel %vm384_vm6, %v341_v46, 0.0 }
 0x11f   : > { %429 = vst [vmem:[%s204_s17] sm:$0xff] %v426_v49  ;;  %v427_v50 = vsel %vm400_vm7, %v344_v48, 0.0 }
 0x120   : > { %430 = vst [vmem:[%s204_s17 + $0x8] sm:$0xff] %v427_v50 }
 0x122   : > { %v346_v52 = vpop.f32.mrf.mxu2 }
 0x123   : > { %v347_v53 = vadd.f32 %v346_v52, %v311_v51 }
 0x125   : > { %v428_v54 = vsel %vm422_vm9, %v347_v53, 0.0 }
 0x126   : > { %431 = vst [vmem:[%s204_s17 + $0x10] sm:$0xff] %v428_v54 }
 0x127 PF: > { %s13_s14 = sadd.s32 1, %s631_s14   ;;  %s723_s12 = smov %s627_s13 }
 0x128   : > { %p10_p5 = scmp.ge.s32.totalorder %s13_s14, 4   ;;  %s724_s13 = smov %s726_s15 }
 0x12a   :  { %12 = sbr.rel (!%p10_p5) target bundleno = 2 (0x2), region = 70 }

</bundles_post_ra>
